<compile_context>
chip_gen: v5e
topology: v5e:2x2
jax: 0.10.0
libtpu: 0.0.40
codegen_flags: <defaults>
</compile_context>

<pallas_src>
from functools import partial

import jax
import jax.numpy as jnp
from jax.experimental import pallas as pl
from jax.experimental.pallas import tpu as pltpu


def _unpool_kernel(x_ref, sel_ref, o_ref, *, kh, g, W):
    # x_ref  : (BR, g*W)      pooled values, kw-duplicated to output width W,
    #                         g consecutive pooled rows packed per kernel row
    # sel_ref: (BR, g*W) i8   per-lane selector: dh of the argmax if this lane is
    #                         the argmax column of its pooled cell, else -1
    # o_ref  : (BR, g*kh*W)   output rows, already in final (n,c,h,w) memory order
    x = x_ref[...]
    sel = sel_ref[...].astype(jnp.int32)
    zero = jnp.zeros_like(x)
    for dh in range(kh):                       # kh is the (tiny) pooling factor
        m = jnp.where(sel == dh, x, zero)      # (BR, g*W)
        for j in range(g):                     # static, small unrolled loop
            s = j * kh + dh
            o_ref[:, s * W:(s + 1) * W] = m[:, j * W:(j + 1) * W]


def _largest_divisor_at_most(n, cap):
    cap = max(1, min(n, cap))
    for d in range(cap, 0, -1):
        if n % d == 0:
            return d
    return 1


def max_unpool2d_pallas(x_pooled, indices, input_size, *, block_rows=1024,
                        target_lanes=512, vmem_budget_bytes=24 * 1024 * 1024):
    """MaxUnpool2d for non-overlapping pooling (stride == kernel_size, padding 0).

    x_pooled, indices: (N, C, Hp, Wp); input_size: (N, C, H, W).
    indices are PyTorch-style flat indices into H*W per (n, c); must fit in int32.
    Returns (N, C, H, W) in x_pooled.dtype.
    """
    # TODO(synk): general MaxUnpool2d (stride != kernel_size or padding != 0, i.e.
    # overlapping / offset windows, with PyTorch's last-write-wins on duplicate
    # indices) needs a window-agnostic scatter; this fast path covers the module's
    # stateful MaxPool2d(k, k, 0) configuration (indices inside their own window).
    N, C, Hp, Wp = x_pooled.shape
    _, _, H, W = input_size
    kh, kw = H // Hp, W // Wp
    assert kh * Hp == H and kw * Wp == W, "input_size must be a multiple of pooled size"

    R0 = N * C * Hp                          # one logical row per pooled output row
    dt = x_pooled.dtype
    dsz = jnp.dtype(dt).itemsize

    # ---- wrapper-side prep: pooled-sized reads, one full-width write (XLA) ----
    x2 = x_pooled.reshape(R0, Wp)
    i2 = indices.reshape(R0, Wp).astype(jnp.int32)          # requires H*W < 2**31
    band_off = (jnp.arange(R0, dtype=jnp.int32) % Hp)[:, None] * (kh * W)
    rel = i2 - band_off                      # flat index relative to this row's kh*W band
    dh = rel // W                            # window-row of the argmax, in [0, kh)
    col = rel - dh * W                       # column (within band) of the argmax, in [0, W)
    if kw > 1:
        x_f = jnp.repeat(x2, kw, axis=1)                    # (R0, W)
        dh_f = jnp.repeat(dh, kw, axis=1)
        col_f = jnp.repeat(col, kw, axis=1)
    else:
        x_f, dh_f, col_f = x2, dh, col
    lane = jnp.arange(W, dtype=jnp.int32)[None, :]
    # int8 selector (1 B/elem index stream): dh where this lane is the argmax
    # position of its pooled cell, -1 otherwise.
    sel = jnp.where(col_f == lane, dh_f, -1).astype(jnp.int8)   # (R0, W)

    # ---- pack g consecutive pooled rows per kernel row so lanes stay dense ----
    band = kh * W
    if band >= target_lanes:
        g = 1
    else:
        g = _largest_divisor_at_most(R0, target_lanes // band)
    R = R0 // g
    x_f = x_f.reshape(R, g * W)
    sel = sel.reshape(R, g * W)

    # ---- choose the row block from a double-buffered VMEM budget (v7x-safe) ----
    row_bytes = g * W * (dsz + 1) + g * kh * W * dsz            # x + sel + out per row
    br_cap = max(32, (vmem_budget_bytes // (2 * row_bytes)) // 32 * 32)
    BR = min(block_rows, br_cap)
    if R <= BR:
        BR = R                               # single block (full-dim exemption)
        if R >= 16:                          # give the parallel axis >= 2 steps (v7x)
            BR = ((pl.cdiv(R, 2) + 7) // 8) * 8
            if BR >= R:
                BR = R
    grid = pl.cdiv(R, BR)                    # ragged tail: masked OOB writes, no pad pass

    out = pl.pallas_call(
        partial(_unpool_kernel, kh=kh, g=g, W=W),
        out_shape=jax.ShapeDtypeStruct((R, g * kh * W), dt),
        grid=(grid,),
        in_specs=[
            pl.BlockSpec((BR, g * W), lambda i: (i, 0)),
            pl.BlockSpec((BR, g * W), lambda i: (i, 0)),
        ],
        out_specs=pl.BlockSpec((BR, g * kh * W), lambda i: (i, 0)),
        compiler_params=pltpu.CompilerParams(
            dimension_semantics=("parallel",),
            vmem_limit_bytes=48 * 1024 * 1024,
        ),
    )(x_f, sel)

    # Rows are already in final (n, c, oh, dh, w) memory order -> free reshape.
    return out.reshape(N, C, H, W)


def max_pool2d_with_indices(x, k):
    """Plain-JAX glue emulating the stateful nn.MaxPool2d(k, k, 0, return_indices=True).

    Returns pooled values and PyTorch-style flat indices into H*W per (n, c).
    """
    N, C, H, W = x.shape
    Ho, Wo = H // k, W // k
    xr = x.reshape(N, C, Ho, k, Wo, k).transpose(0, 1, 2, 4, 3, 5)   # (N,C,Ho,Wo,k,k)
    xw = xr.reshape(N, C, Ho, Wo, k * k)
    arg = jnp.argmax(xw, axis=-1)                                    # (N,C,Ho,Wo)
    pooled = jnp.max(xw, axis=-1)
    dh = arg // k
    dw = arg % k
    oh = jnp.arange(Ho)[None, None, :, None]
    ow = jnp.arange(Wo)[None, None, None, :]
    flat_idx = (oh * k + dh) * W + (ow * k + dw)                     # flat into H*W
    return pooled, flat_idx.astype(jnp.int32)


if __name__ == "__main__":
    key = jax.random.PRNGKey(0)
    N, C, H, W = 2, 4, 16, 16
    kernel_size = 2  # pooling = nn.MaxPool2d(2, 2, 0, return_indices=True)

    x_img = jax.random.normal(key, (N, C, H, W), dtype=jnp.float32)

    # Stateful pooling pass (glue, plain JAX) -> pooled values + saved indices.
    x_pooled, indices = max_pool2d_with_indices(x_img, kernel_size)

    # StatefulMaxUnpool2d.forward : the Pallas kernel scatter.
    out = max_unpool2d_pallas(x_pooled, indices, (N, C, H, W))
    out = jax.block_until_ready(out)

    # Reference scatter (plain JAX) for correctness.
    NC = N * C
    P = (H // kernel_size) * (W // kernel_size)
    ref = jnp.zeros((NC, H * W), jnp.float32).at[
        jnp.arange(NC)[:, None], indices.reshape(NC, P)
    ].set(x_pooled.reshape(NC, P)).reshape(N, C, H, W)

    assert out.shape == (N, C, H, W)
    assert out.dtype == x_pooled.dtype
    assert jnp.allclose(out, ref, atol=1e-6), "mismatch vs reference unpool"
    print("KERNEL_OK")
</pallas_src>

<mosaic_0001>
module attributes {stable_mosaic.version = 11 : i64} {
  func.func @_unpool_kernel(%arg0: i32, %arg1: memref<4x256xf32, #tpu.memory_space<vmem>>, %arg2: memref<4x256xi8, #tpu.memory_space<vmem>>, %arg3: memref<4x512xf32, #tpu.memory_space<vmem>>) attributes {dimension_semantics = [#tpu.dimension_semantics<parallel>], iteration_bounds = array<i64: 1>, scalar_prefetch = 0 : i64, scratch_operands = 0 : i64, tpu.core_type = #tpu.core_type<tc>, window_params = [{transform_indices = @transform_0, window_bounds = array<i64: 4, 256>}, {transform_indices = @transform_1, window_bounds = array<i64: 4, 256>}, {transform_indices = @transform_2, window_bounds = array<i64: 4, 512>}]} {
    %c0 = arith.constant 0 : index
    %c0_0 = arith.constant 0 : index
    %0 = vector.load %arg1[%c0, %c0_0] : memref<4x256xf32, #tpu.memory_space<vmem>>, vector<4x256xf32>
    %c0_1 = arith.constant 0 : index
    %c0_2 = arith.constant 0 : index
    %1 = vector.load %arg2[%c0_1, %c0_2] : memref<4x256xi8, #tpu.memory_space<vmem>>, vector<4x256xi8>
    %2 = arith.extsi %1 : vector<4x256xi8> to vector<4x256xi32>
    %cst = arith.constant 0.000000e+00 : f32
    %3 = vector.broadcast %cst : f32 to vector<4x256xf32>
    %c0_i32 = arith.constant 0 : i32
    %4 = vector.broadcast %c0_i32 : i32 to vector<4x256xi32>
    %5 = arith.cmpi eq, %2, %4 : vector<4x256xi32>
    %6 = arith.select %5, %0, %3 : vector<4x256xi1>, vector<4x256xf32>
    %7 = vector.extract_strided_slice %6 {offsets = [0, 0], sizes = [4, 16], strides = [1, 1]} : vector<4x256xf32> to vector<4x16xf32>
    %c0_3 = arith.constant 0 : index
    %c0_4 = arith.constant 0 : index
    %8 = vector.load %arg3[%c0_3, %c0_4] : memref<4x512xf32, #tpu.memory_space<vmem>>, vector<4x16xf32>
    tpu.vector_store %arg3[%c0_3, %c0_4], %7 {strides = array<i32>} : memref<4x512xf32, #tpu.memory_space<vmem>>, vector<4x16xf32>,
    %9 = vector.extract_strided_slice %6 {offsets = [0, 16], sizes = [4, 16], strides = [1, 1]} : vector<4x256xf32> to vector<4x16xf32>
    %c0_5 = arith.constant 0 : index
    %c32 = arith.constant 32 : index
    %10 = vector.load %arg3[%c0_5, %c32] : memref<4x512xf32, #tpu.memory_space<vmem>>, vector<4x16xf32>
    tpu.vector_store %arg3[%c0_5, %c32], %9 {strides = array<i32>} : memref<4x512xf32, #tpu.memory_space<vmem>>, vector<4x16xf32>,
    %11 = vector.extract_strided_slice %6 {offsets = [0, 32], sizes = [4, 16], strides = [1, 1]} : vector<4x256xf32> to vector<4x16xf32>
    %c0_6 = arith.constant 0 : index
    %c64 = arith.constant 64 : index
    %12 = vector.load %arg3[%c0_6, %c64] : memref<4x512xf32, #tpu.memory_space<vmem>>, vector<4x16xf32>
    tpu.vector_store %arg3[%c0_6, %c64], %11 {strides = array<i32>} : memref<4x512xf32, #tpu.memory_space<vmem>>, vector<4x16xf32>,
    %13 = vector.extract_strided_slice %6 {offsets = [0, 48], sizes = [4, 16], strides = [1, 1]} : vector<4x256xf32> to vector<4x16xf32>
    %c0_7 = arith.constant 0 : index
    %c96 = arith.constant 96 : index
    %14 = vector.load %arg3[%c0_7, %c96] : memref<4x512xf32, #tpu.memory_space<vmem>>, vector<4x16xf32>
    tpu.vector_store %arg3[%c0_7, %c96], %13 {strides = array<i32>} : memref<4x512xf32, #tpu.memory_space<vmem>>, vector<4x16xf32>,
    %15 = vector.extract_strided_slice %6 {offsets = [0, 64], sizes = [4, 16], strides = [1, 1]} : vector<4x256xf32> to vector<4x16xf32>
    %c0_8 = arith.constant 0 : index
    %c128 = arith.constant 128 : index
    %16 = vector.load %arg3[%c0_8, %c128] : memref<4x512xf32, #tpu.memory_space<vmem>>, vector<4x16xf32>
    tpu.vector_store %arg3[%c0_8, %c128], %15 {strides = array<i32>} : memref<4x512xf32, #tpu.memory_space<vmem>>, vector<4x16xf32>,
    %17 = vector.extract_strided_slice %6 {offsets = [0, 80], sizes = [4, 16], strides = [1, 1]} : vector<4x256xf32> to vector<4x16xf32>
    %c0_9 = arith.constant 0 : index
    %c160 = arith.constant 160 : index
    %18 = vector.load %arg3[%c0_9, %c160] : memref<4x512xf32, #tpu.memory_space<vmem>>, vector<4x16xf32>
    tpu.vector_store %arg3[%c0_9, %c160], %17 {strides = array<i32>} : memref<4x512xf32, #tpu.memory_space<vmem>>, vector<4x16xf32>,
    %19 = vector.extract_strided_slice %6 {offsets = [0, 96], sizes = [4, 16], strides = [1, 1]} : vector<4x256xf32> to vector<4x16xf32>
    %c0_10 = arith.constant 0 : index
    %c192 = arith.constant 192 : index
    %20 = vector.load %arg3[%c0_10, %c192] : memref<4x512xf32, #tpu.memory_space<vmem>>, vector<4x16xf32>
    tpu.vector_store %arg3[%c0_10, %c192], %19 {strides = array<i32>} : memref<4x512xf32, #tpu.memory_space<vmem>>, vector<4x16xf32>,
    %21 = vector.extract_strided_slice %6 {offsets = [0, 112], sizes = [4, 16], strides = [1, 1]} : vector<4x256xf32> to vector<4x16xf32>
    %c0_11 = arith.constant 0 : index
    %c224 = arith.constant 224 : index
    %22 = vector.load %arg3[%c0_11, %c224] : memref<4x512xf32, #tpu.memory_space<vmem>>, vector<4x16xf32>
    tpu.vector_store %arg3[%c0_11, %c224], %21 {strides = array<i32>} : memref<4x512xf32, #tpu.memory_space<vmem>>, vector<4x16xf32>,
    %23 = vector.extract_strided_slice %6 {offsets = [0, 128], sizes = [4, 16], strides = [1, 1]} : vector<4x256xf32> to vector<4x16xf32>
    %c0_12 = arith.constant 0 : index
    %c256 = arith.constant 256 : index
    %24 = vector.load %arg3[%c0_12, %c256] : memref<4x512xf32, #tpu.memory_space<vmem>>, vector<4x16xf32>
    tpu.vector_store %arg3[%c0_12, %c256], %23 {strides = array<i32>} : memref<4x512xf32, #tpu.memory_space<vmem>>, vector<4x16xf32>,
    %25 = vector.extract_strided_slice %6 {offsets = [0, 144], sizes = [4, 16], strides = [1, 1]} : vector<4x256xf32> to vector<4x16xf32>
    %c0_13 = arith.constant 0 : index
    %c288 = arith.constant 288 : index
    %26 = vector.load %arg3[%c0_13, %c288] : memref<4x512xf32, #tpu.memory_space<vmem>>, vector<4x16xf32>
    tpu.vector_store %arg3[%c0_13, %c288], %25 {strides = array<i32>} : memref<4x512xf32, #tpu.memory_space<vmem>>, vector<4x16xf32>,
    %27 = vector.extract_strided_slice %6 {offsets = [0, 160], sizes = [4, 16], strides = [1, 1]} : vector<4x256xf32> to vector<4x16xf32>
    %c0_14 = arith.constant 0 : index
    %c320 = arith.constant 320 : index
    %28 = vector.load %arg3[%c0_14, %c320] : memref<4x512xf32, #tpu.memory_space<vmem>>, vector<4x16xf32>
    tpu.vector_store %arg3[%c0_14, %c320], %27 {strides = array<i32>} : memref<4x512xf32, #tpu.memory_space<vmem>>, vector<4x16xf32>,
    %29 = vector.extract_strided_slice %6 {offsets = [0, 176], sizes = [4, 16], strides = [1, 1]} : vector<4x256xf32> to vector<4x16xf32>
    %c0_15 = arith.constant 0 : index
    %c352 = arith.constant 352 : index
    %30 = vector.load %arg3[%c0_15, %c352] : memref<4x512xf32, #tpu.memory_space<vmem>>, vector<4x16xf32>
    tpu.vector_store %arg3[%c0_15, %c352], %29 {strides = array<i32>} : memref<4x512xf32, #tpu.memory_space<vmem>>, vector<4x16xf32>,
    %31 = vector.extract_strided_slice %6 {offsets = [0, 192], sizes = [4, 16], strides = [1, 1]} : vector<4x256xf32> to vector<4x16xf32>
    %c0_16 = arith.constant 0 : index
    %c384 = arith.constant 384 : index
    %32 = vector.load %arg3[%c0_16, %c384] : memref<4x512xf32, #tpu.memory_space<vmem>>, vector<4x16xf32>
    tpu.vector_store %arg3[%c0_16, %c384], %31 {strides = array<i32>} : memref<4x512xf32, #tpu.memory_space<vmem>>, vector<4x16xf32>,
    %33 = vector.extract_strided_slice %6 {offsets = [0, 208], sizes = [4, 16], strides = [1, 1]} : vector<4x256xf32> to vector<4x16xf32>
    %c0_17 = arith.constant 0 : index
    %c416 = arith.constant 416 : index
    %34 = vector.load %arg3[%c0_17, %c416] : memref<4x512xf32, #tpu.memory_space<vmem>>, vector<4x16xf32>
    tpu.vector_store %arg3[%c0_17, %c416], %33 {strides = array<i32>} : memref<4x512xf32, #tpu.memory_space<vmem>>, vector<4x16xf32>,
    %35 = vector.extract_strided_slice %6 {offsets = [0, 224], sizes = [4, 16], strides = [1, 1]} : vector<4x256xf32> to vector<4x16xf32>
    %c0_18 = arith.constant 0 : index
    %c448 = arith.constant 448 : index
    %36 = vector.load %arg3[%c0_18, %c448] : memref<4x512xf32, #tpu.memory_space<vmem>>, vector<4x16xf32>
    tpu.vector_store %arg3[%c0_18, %c448], %35 {strides = array<i32>} : memref<4x512xf32, #tpu.memory_space<vmem>>, vector<4x16xf32>,
    %37 = vector.extract_strided_slice %6 {offsets = [0, 240], sizes = [4, 16], strides = [1, 1]} : vector<4x256xf32> to vector<4x16xf32>
    %c0_19 = arith.constant 0 : index
    %c480 = arith.constant 480 : index
    %38 = vector.load %arg3[%c0_19, %c480] : memref<4x512xf32, #tpu.memory_space<vmem>>, vector<4x16xf32>
    tpu.vector_store %arg3[%c0_19, %c480], %37 {strides = array<i32>} : memref<4x512xf32, #tpu.memory_space<vmem>>, vector<4x16xf32>,
    %c1_i32 = arith.constant 1 : i32
    %39 = vector.broadcast %c1_i32 : i32 to vector<4x256xi32>
    %40 = arith.cmpi eq, %2, %39 : vector<4x256xi32>
    %41 = arith.select %40, %0, %3 : vector<4x256xi1>, vector<4x256xf32>
    %42 = vector.extract_strided_slice %41 {offsets = [0, 0], sizes = [4, 16], strides = [1, 1]} : vector<4x256xf32> to vector<4x16xf32>
    %c0_20 = arith.constant 0 : index
    %c16 = arith.constant 16 : index
    %43 = vector.load %arg3[%c0_20, %c16] : memref<4x512xf32, #tpu.memory_space<vmem>>, vector<4x16xf32>
    tpu.vector_store %arg3[%c0_20, %c16], %42 {strides = array<i32>} : memref<4x512xf32, #tpu.memory_space<vmem>>, vector<4x16xf32>,
    %44 = vector.extract_strided_slice %41 {offsets = [0, 16], sizes = [4, 16], strides = [1, 1]} : vector<4x256xf32> to vector<4x16xf32>
    %c0_21 = arith.constant 0 : index
    %c48 = arith.constant 48 : index
    %45 = vector.load %arg3[%c0_21, %c48] : memref<4x512xf32, #tpu.memory_space<vmem>>, vector<4x16xf32>
    tpu.vector_store %arg3[%c0_21, %c48], %44 {strides = array<i32>} : memref<4x512xf32, #tpu.memory_space<vmem>>, vector<4x16xf32>,
    %46 = vector.extract_strided_slice %41 {offsets = [0, 32], sizes = [4, 16], strides = [1, 1]} : vector<4x256xf32> to vector<4x16xf32>
    %c0_22 = arith.constant 0 : index
    %c80 = arith.constant 80 : index
    %47 = vector.load %arg3[%c0_22, %c80] : memref<4x512xf32, #tpu.memory_space<vmem>>, vector<4x16xf32>
    tpu.vector_store %arg3[%c0_22, %c80], %46 {strides = array<i32>} : memref<4x512xf32, #tpu.memory_space<vmem>>, vector<4x16xf32>,
    %48 = vector.extract_strided_slice %41 {offsets = [0, 48], sizes = [4, 16], strides = [1, 1]} : vector<4x256xf32> to vector<4x16xf32>
    %c0_23 = arith.constant 0 : index
    %c112 = arith.constant 112 : index
    %49 = vector.load %arg3[%c0_23, %c112] : memref<4x512xf32, #tpu.memory_space<vmem>>, vector<4x16xf32>
    tpu.vector_store %arg3[%c0_23, %c112], %48 {strides = array<i32>} : memref<4x512xf32, #tpu.memory_space<vmem>>, vector<4x16xf32>,
    %50 = vector.extract_strided_slice %41 {offsets = [0, 64], sizes = [4, 16], strides = [1, 1]} : vector<4x256xf32> to vector<4x16xf32>
    %c0_24 = arith.constant 0 : index
    %c144 = arith.constant 144 : index
    %51 = vector.load %arg3[%c0_24, %c144] : memref<4x512xf32, #tpu.memory_space<vmem>>, vector<4x16xf32>
    tpu.vector_store %arg3[%c0_24, %c144], %50 {strides = array<i32>} : memref<4x512xf32, #tpu.memory_space<vmem>>, vector<4x16xf32>,
    %52 = vector.extract_strided_slice %41 {offsets = [0, 80], sizes = [4, 16], strides = [1, 1]} : vector<4x256xf32> to vector<4x16xf32>
    %c0_25 = arith.constant 0 : index
    %c176 = arith.constant 176 : index
    %53 = vector.load %arg3[%c0_25, %c176] : memref<4x512xf32, #tpu.memory_space<vmem>>, vector<4x16xf32>
    tpu.vector_store %arg3[%c0_25, %c176], %52 {strides = array<i32>} : memref<4x512xf32, #tpu.memory_space<vmem>>, vector<4x16xf32>,
    %54 = vector.extract_strided_slice %41 {offsets = [0, 96], sizes = [4, 16], strides = [1, 1]} : vector<4x256xf32> to vector<4x16xf32>
    %c0_26 = arith.constant 0 : index
    %c208 = arith.constant 208 : index
    %55 = vector.load %arg3[%c0_26, %c208] : memref<4x512xf32, #tpu.memory_space<vmem>>, vector<4x16xf32>
    tpu.vector_store %arg3[%c0_26, %c208], %54 {strides = array<i32>} : memref<4x512xf32, #tpu.memory_space<vmem>>, vector<4x16xf32>,
    %56 = vector.extract_strided_slice %41 {offsets = [0, 112], sizes = [4, 16], strides = [1, 1]} : vector<4x256xf32> to vector<4x16xf32>
    %c0_27 = arith.constant 0 : index
    %c240 = arith.constant 240 : index
    %57 = vector.load %arg3[%c0_27, %c240] : memref<4x512xf32, #tpu.memory_space<vmem>>, vector<4x16xf32>
    tpu.vector_store %arg3[%c0_27, %c240], %56 {strides = array<i32>} : memref<4x512xf32, #tpu.memory_space<vmem>>, vector<4x16xf32>,
    %58 = vector.extract_strided_slice %41 {offsets = [0, 128], sizes = [4, 16], strides = [1, 1]} : vector<4x256xf32> to vector<4x16xf32>
    %c0_28 = arith.constant 0 : index
    %c272 = arith.constant 272 : index
    %59 = vector.load %arg3[%c0_28, %c272] : memref<4x512xf32, #tpu.memory_space<vmem>>, vector<4x16xf32>
    tpu.vector_store %arg3[%c0_28, %c272], %58 {strides = array<i32>} : memref<4x512xf32, #tpu.memory_space<vmem>>, vector<4x16xf32>,
    %60 = vector.extract_strided_slice %41 {offsets = [0, 144], sizes = [4, 16], strides = [1, 1]} : vector<4x256xf32> to vector<4x16xf32>
    %c0_29 = arith.constant 0 : index
    %c304 = arith.constant 304 : index
    %61 = vector.load %arg3[%c0_29, %c304] : memref<4x512xf32, #tpu.memory_space<vmem>>, vector<4x16xf32>
    tpu.vector_store %arg3[%c0_29, %c304], %60 {strides = array<i32>} : memref<4x512xf32, #tpu.memory_space<vmem>>, vector<4x16xf32>,
    %62 = vector.extract_strided_slice %41 {offsets = [0, 160], sizes = [4, 16], strides = [1, 1]} : vector<4x256xf32> to vector<4x16xf32>
    %c0_30 = arith.constant 0 : index
    %c336 = arith.constant 336 : index
    %63 = vector.load %arg3[%c0_30, %c336] : memref<4x512xf32, #tpu.memory_space<vmem>>, vector<4x16xf32>
    tpu.vector_store %arg3[%c0_30, %c336], %62 {strides = array<i32>} : memref<4x512xf32, #tpu.memory_space<vmem>>, vector<4x16xf32>,
    %64 = vector.extract_strided_slice %41 {offsets = [0, 176], sizes = [4, 16], strides = [1, 1]} : vector<4x256xf32> to vector<4x16xf32>
    %c0_31 = arith.constant 0 : index
    %c368 = arith.constant 368 : index
    %65 = vector.load %arg3[%c0_31, %c368] : memref<4x512xf32, #tpu.memory_space<vmem>>, vector<4x16xf32>
    tpu.vector_store %arg3[%c0_31, %c368], %64 {strides = array<i32>} : memref<4x512xf32, #tpu.memory_space<vmem>>, vector<4x16xf32>,
    %66 = vector.extract_strided_slice %41 {offsets = [0, 192], sizes = [4, 16], strides = [1, 1]} : vector<4x256xf32> to vector<4x16xf32>
    %c0_32 = arith.constant 0 : index
    %c400 = arith.constant 400 : index
    %67 = vector.load %arg3[%c0_32, %c400] : memref<4x512xf32, #tpu.memory_space<vmem>>, vector<4x16xf32>
    tpu.vector_store %arg3[%c0_32, %c400], %66 {strides = array<i32>} : memref<4x512xf32, #tpu.memory_space<vmem>>, vector<4x16xf32>,
    %68 = vector.extract_strided_slice %41 {offsets = [0, 208], sizes = [4, 16], strides = [1, 1]} : vector<4x256xf32> to vector<4x16xf32>
    %c0_33 = arith.constant 0 : index
    %c432 = arith.constant 432 : index
    %69 = vector.load %arg3[%c0_33, %c432] : memref<4x512xf32, #tpu.memory_space<vmem>>, vector<4x16xf32>
    tpu.vector_store %arg3[%c0_33, %c432], %68 {strides = array<i32>} : memref<4x512xf32, #tpu.memory_space<vmem>>, vector<4x16xf32>,
    %70 = vector.extract_strided_slice %41 {offsets = [0, 224], sizes = [4, 16], strides = [1, 1]} : vector<4x256xf32> to vector<4x16xf32>
    %c0_34 = arith.constant 0 : index
    %c464 = arith.constant 464 : index
    %71 = vector.load %arg3[%c0_34, %c464] : memref<4x512xf32, #tpu.memory_space<vmem>>, vector<4x16xf32>
    tpu.vector_store %arg3[%c0_34, %c464], %70 {strides = array<i32>} : memref<4x512xf32, #tpu.memory_space<vmem>>, vector<4x16xf32>,
    %72 = vector.extract_strided_slice %41 {offsets = [0, 240], sizes = [4, 16], strides = [1, 1]} : vector<4x256xf32> to vector<4x16xf32>
    %c0_35 = arith.constant 0 : index
    %c496 = arith.constant 496 : index
    %73 = vector.load %arg3[%c0_35, %c496] : memref<4x512xf32, #tpu.memory_space<vmem>>, vector<4x16xf32>
    tpu.vector_store %arg3[%c0_35, %c496], %72 {strides = array<i32>} : memref<4x512xf32, #tpu.memory_space<vmem>>, vector<4x16xf32>,
    return
  }
  func.func @transform_0(%arg0: i32) -> (i32, i32) {
    %c0_i32 = arith.constant 0 : i32
    %c0_i32_0 = arith.constant 0 : i32
    return %arg0, %c0_i32 : i32, i32
  }
  func.func @transform_1(%arg0: i32) -> (i32, i32) {
    %c0_i32 = arith.constant 0 : i32
    %c0_i32_0 = arith.constant 0 : i32
    return %arg0, %c0_i32 : i32, i32
  }
  func.func @transform_2(%arg0: i32) -> (i32, i32) {
    %c0_i32 = arith.constant 0 : i32
    %c0_i32_0 = arith.constant 0 : i32
    return %arg0, %c0_i32 : i32, i32
  }
}

</mosaic_0001>

<bundles_post_ra>
// kernel: tpu_custom_call.1
= control target key start
LH: loop header
LB: loop body
LE: loop exit
PB: predicated region body
PF: predicated region fallthrough
CT: control target
= control target key end

     0   :  { %7 = vsyncpa [#allocation3], 0  ;;  %s359_s0 = inlined_call_operand.hbm [shape: f32[4,256], index: 0, kind: input, shape index: {}]   ;;  %s360_s1 = inlined_call_operand.hbm [shape: s8[4,256], index: 1, kind: input, shape index: {}]   ;;  %s361_s2 = inlined_call_operand.hbm [shape: f32[4,512], index: 2, kind: output, shape index: {}]  }
   0x1   :  { %8 = vsyncpa [#allocation6], 0 }
   0x2   :  { %9 = vsyncpa [#allocation4], 0  ;;  %s15_s11 = sshll.u32 %s359_s0, 4  ;;  %s280_s12 = smov [#allocation2]   ;;  %s16_s11 = int_to_ptr.hbm [resolvable:$true] %s15_s11 }
   0x3   :  { %s17_s13 = sshll.u32 %s280_s12, 4  ;;  %s26_s16 = sshll.u32 %s360_s1, 4  ;;  %s18_s13 = int_to_ptr.vmem [resolvable:$true] %s17_s13  ;;  %s27_s16 = int_to_ptr.hbm [resolvable:$true] %s26_s16 }
   0x4   :  { %20 = dma.hbm_to_vmem [thread:$0]  %s16_s11, 128, %s18_s13, [#allocation3]  }
   0x5   :  { %s281_s17 = smov [#allocation5]  }
   0x6   :  { %s28_s18 = sshll.u32 %s281_s17, 4  ;;  %s29_s18 = int_to_ptr.vmem [resolvable:$true] %s28_s18 }
   0x7   :  { %31 = dma.hbm_to_vmem [thread:$0]  %s27_s16, 32, %s29_s18, [#allocation6]  }
   0x8   :  { %274 = dma.done.wait [#allocation3], 128  }
   0x9   :  { %275 = vsyncadd [#allocation3], 4294967168 }
   0xa   :  { %276 = dma.done.wait [#allocation6], 32  }
   0xb   :  { %277 = vsyncadd [#allocation6], 4294967264  ;;  %v41_v0 = vld [vmem:[#allocation5] sm:$0x3]  ;;  %v40_v1 = vld [vmem:[#allocation2] sm:$0xff]  ;;  %s282_s0 = smov 32  }
   0xc   :  { %v42_v2 = vunpack.c.0.s8 %v41_v0  ;;  %s283_s19 = smov 16   ;;  %s284_s1 = smov 48   ;;  %vm45_vm2 = vcmask 125952   ;;  %vm51_vm3 = vcmask 388352   ;;  %vm56_vm4 = vcmask 650752  }
   0xd   :  { %s285_s20 = smov 80   ;;  %s286_s21 = smov 64   ;;  %vm88_vm5 = vcmask 261120   ;;  %vm83_vm6 = vcmask 130048   ;;  %vm61_vm7 = vcmask 913152   ;;  %vm93_vm8 = vcmask 392192  }
   0xe   :  { %vm43_vm0 = vcmp.eq.s32.totalorder %v42_v2, 0  ;;  %s287_s22 = smov 96   ;;  %vm109_vm1 = vcmp.eq.s32.totalorder %v42_v2, 1  ;;  %s288_s23 = smov 112   ;;  %vm115_vm9 = vcmask 257152   ;;  %vm120_vm10 = vcmask 519552  }
   0xf   :  { %v44_v3 = vsel %vm43_vm0, %v40_v1, 0.0  ;;  %v311_v4 = vsel %vm109_vm1, %v40_v1, 0.0  ;;  %vm125_vm11 = vcmask 781952   ;;  %vm158_vm12 = vcmask 523264   ;;  %s289_s24 = smov [#allocation7]   ;;  %s181_s28 = sshll.u32 %s361_s2, 4  ;;  %s182_s28 = int_to_ptr.hbm [resolvable:$true] %s181_s28 }
  0x10   :  { %53 = vrot.lane.b32.xlu1 %v44_v3, %s282_s0  ;;  %48 = vrot.lane.b32.xlu0 %v44_v3, %s283_s19  ;;  %46 = vst.msk [vmem:[#allocation7] sm:$0xf] %vm45_vm2, %v44_v3  ;;  %v79_v5 = vrot.slane %v44_v3, 4  ;;  %s179_s25 = sshll.u32 %s289_s24, 4  ;;  %vm130_vm13 = vcmask 1044352   ;;  %v171_v40 = vrot.slane %v311_v4, 4  ;;  %s180_s25 = int_to_ptr.vmem [resolvable:$true] %s179_s25 }
  0x11   :  { %58 = vrot.lane.b32.xlu2 %v44_v3, %s284_s1 }
  0x12   :  { %81 = vst.msk [vmem:[#allocation7 + $0x8] sm:$0xf] %vm45_vm2, %v79_v5 }
  0x18   :  { %67 = vrot.lane.b32.xlu1 %v44_v3, %s285_s20  ;;  %63 = vrot.lane.b32.xlu0 %v44_v3, %s286_s21 }
  0x19   :  { %71 = vrot.lane.b32.xlu2 %v44_v3, %s287_s22 }
  0x20   :  { %112 = vrot.lane.b32.xlu1 %v311_v4, %s283_s19  ;;  %75 = vrot.lane.b32.xlu0 %v44_v3, %s288_s23 }
  0x21   :  { %117 = vrot.lane.b32.xlu2 %v311_v4, %s282_s0 }
  0x28   :  { %122 = vrot.lane.b32.xlu1 %v311_v4, %s284_s1  ;;  %132 = vrot.lane.b32.xlu0 %v311_v4, %s285_s20 }
  0x29   :  { %136 = vrot.lane.b32.xlu2 %v311_v4, %s287_s22 }
  0x30   :  { %140 = vrot.lane.b32.xlu1 %v311_v4, %s288_s23  ;;  %127 = vrot.lane.b32.xlu0 %v311_v4, %s286_s21 }
  0x6b   :  { %v59_v6 = vpop.permute.xlu2 %58 }
  0x6c   :  { %v92_v7 = vrot.slane %v59_v6, 4 }
  0x6e   :  { %v94_v15 = vsel %vm93_vm8, %v59_v6, %v92_v7 }
  0x73   :  { %v72_v12 = vpop.permute.xlu2 %71 }
  0x74   :  { %v103_v20 = vrot.slane %v72_v12, 4 }
  0x7b   :  { %v118_v21 = vpop.permute.xlu2 %117 }
  0x7c   :  { %v149_v22 = vrot.slane %v118_v21, 4 }
  0x7e   :  { %v150_v28 = vsel %vm88_vm5, %v118_v21, %v149_v22 }
  0x82   :  { %v54_v8 = vpop.permute.xlu1 %53  ;;  %v49_v9 = vpop.permute.xlu0 %48 }
  0x83   :  { %v87_v10 = vrot.slane %v54_v8, 4  ;;  %52 = vst.msk [vmem:[#allocation7] sm:$0xf] %vm51_vm3, %v49_v9  ;;  %v82_v11 = vrot.slane %v49_v9, 4  ;;  %v137_v29 = vpop.permute.xlu2 %136 }
  0x84   :  { %57 = vst.msk [vmem:[#allocation7] sm:$0xf] %vm56_vm4, %v54_v8  ;;  %v165_v34 = vrot.slane %v137_v29, 4 }
  0x85   :  { %v89_v13 = vsel %vm88_vm5, %v54_v8, %v87_v10  ;;  %v84_v14 = vsel %vm83_vm6, %v49_v9, %v82_v11  ;;  %62 = vst.msk [vmem:[#allocation7] sm:$0xf] %vm61_vm7, %v59_v6 }
  0x86   :  { %86 = vst.msk [vmem:[#allocation7 + $0x8] sm:$0xf] %vm51_vm3, %v84_v14 }
  0x87   :  { %91 = vst.msk [vmem:[#allocation7 + $0x8] sm:$0xf] %vm56_vm4, %v89_v13 }
  0x88   :  { %96 = vst.msk [vmem:[#allocation7 + $0x8] sm:$0xf] %vm61_vm7, %v94_v15 }
  0x8a   :  { %v68_v16 = vpop.permute.xlu1 %67  ;;  %v64_v17 = vpop.permute.xlu0 %63 }
  0x8b   :  { %v100_v18 = vrot.slane %v68_v16, 4  ;;  %66 = vst.msk [vmem:[#allocation7 + $0x4] sm:$0xf] %vm45_vm2, %v64_v17  ;;  %v97_v19 = vrot.slane %v64_v17, 4 }
  0x8c   :  { %70 = vst.msk [vmem:[#allocation7 + $0x4] sm:$0xf] %vm51_vm3, %v68_v16 }
  0x8d   :  { %99 = vst.msk [vmem:[#allocation7 + $0xc] sm:$0xf] %vm45_vm2, %v97_v19 }
  0x8e   :  { %102 = vst.msk [vmem:[#allocation7 + $0xc] sm:$0xf] %vm51_vm3, %v100_v18 }
  0x8f   :  { %74 = vst.msk [vmem:[#allocation7 + $0x4] sm:$0xf] %vm56_vm4, %v72_v12 }
  0x90   :  { %105 = vst.msk [vmem:[#allocation7 + $0xc] sm:$0xf] %vm56_vm4, %v103_v20 }
  0x92   :  { %v113_v23 = vpop.permute.xlu1 %112  ;;  %v76_v24 = vpop.permute.xlu0 %75 }
  0x93   :  { %116 = vst.msk [vmem:[#allocation7] sm:$0xf] %vm115_vm9, %v113_v23  ;;  %v145_v25 = vrot.slane %v113_v23, 4  ;;  %v106_v26 = vrot.slane %v76_v24, 4 }
  0x94   :  { %78 = vst.msk [vmem:[#allocation7 + $0x4] sm:$0xf] %vm61_vm7, %v76_v24 }
  0x95   :  { %v146_v27 = vsel %vm83_vm6, %v113_v23, %v145_v25  ;;  %108 = vst.msk [vmem:[#allocation7 + $0xc] sm:$0xf] %vm61_vm7, %v106_v26 }
  0x96   :  { %148 = vst.msk [vmem:[#allocation7 + $0x8] sm:$0xf] %vm115_vm9, %v146_v27 }
  0x97   :  { %121 = vst.msk [vmem:[#allocation7] sm:$0xf] %vm120_vm10, %v118_v21 }
  0x98   :  { %152 = vst.msk [vmem:[#allocation7 + $0x8] sm:$0xf] %vm120_vm10, %v150_v28 }
  0x9a   :  { %v123_v30 = vpop.permute.xlu1 %122  ;;  %v133_v31 = vpop.permute.xlu0 %132 }
  0x9b   :  { %126 = vst.msk [vmem:[#allocation7] sm:$0xf] %vm125_vm11, %v123_v30  ;;  %v153_v32 = vrot.slane %v123_v30, 4  ;;  %v162_v33 = vrot.slane %v133_v31, 4 }
  0x9c   :  { %135 = vst.msk [vmem:[#allocation7 + $0x4] sm:$0xf] %vm115_vm9, %v133_v31 }
  0x9d   :  { %v154_v35 = vsel %vm93_vm8, %v123_v30, %v153_v32  ;;  %164 = vst.msk [vmem:[#allocation7 + $0xc] sm:$0xf] %vm115_vm9, %v162_v33 }
  0x9e   :  { %156 = vst.msk [vmem:[#allocation7 + $0x8] sm:$0xf] %vm125_vm11, %v154_v35 }
  0x9f   :  { %139 = vst.msk [vmem:[#allocation7 + $0x4] sm:$0xf] %vm120_vm10, %v137_v29 }
  0xa0   :  { %167 = vst.msk [vmem:[#allocation7 + $0xc] sm:$0xf] %vm120_vm10, %v165_v34 }
  0xa2   :  { %v141_v36 = vpop.permute.xlu1 %140  ;;  %v128_v37 = vpop.permute.xlu0 %127 }
  0xa3   :  { %143 = vst.msk [vmem:[#allocation7 + $0x4] sm:$0xf] %vm125_vm11, %v141_v36  ;;  %v168_v38 = vrot.slane %v141_v36, 4  ;;  %v157_v39 = vrot.slane %v128_v37, 4 }
  0xa4   :  { %144 = vst.msk [vmem:[#allocation7 + $0x4] sm:$0xf] %vm130_vm13, %v311_v4 }
  0xa5   :  { %170 = vst.msk [vmem:[#allocation7 + $0xc] sm:$0xf] %vm125_vm11, %v168_v38  ;;  %v159_v41 = vsel %vm158_vm12, %v128_v37, %v157_v39 }
  0xa6   :  { %131 = vst.msk [vmem:[#allocation7] sm:$0xf] %vm130_vm13, %v128_v37 }
  0xa7   :  { %161 = vst.msk [vmem:[#allocation7 + $0x8] sm:$0xf] %vm130_vm13, %v159_v41 }
  0xa8   :  { %173 = vst.msk [vmem:[#allocation7 + $0xc] sm:$0xf] %vm130_vm13, %v171_v40 }
  0xa9   :  { %184 = dma.vmem_to_hbm [thread:$0]  %s180_s25, 256, %s182_s28, [#allocation4]  }
  0xaa   :  { %278 = dma.done.wait [#allocation4], 256  }
  0xab   :  { %279 = vsyncadd [#allocation4], 4294967040 }
  0xac   :  { %189 = vsyncpa [#allocation3], 1 }
  0xad   :  { %190 = vsyncpa [#allocation6], 1 }
  0xae   :  { %191 = vsyncpa [#allocation4], 1 }

</bundles_post_ra>
